<compile_context>
chip_gen: v7x
topology: tpu7x:2x2x1
jax: 0.10.0
libtpu: 0.0.40
codegen_flags: <defaults>
</compile_context>

<pallas_src>
import functools

import jax
import jax.numpy as jnp
from jax import lax
from jax.experimental import pallas as pl
from jax.experimental.pallas import tpu as pltpu


# ----------------------------------------------------------------------------
# Fused kernel: (3x3 conv + BN + ReLU) -> (5x5 conv + BN + ReLU).
# One batch-block per grid step; all activations live in VMEM in (rows, W*C)
# lane-dense layout.  BN scale is pre-folded into the weights; epilogue is
# bias-add + ReLU.
# ----------------------------------------------------------------------------
def _fused_input_kernel(x_ref, w1_ref, b1_ref, w2_ref, b2_ref, o_ref,
                        pad1_ref, pad2_ref, *, B, H, W, Cin, Cout):
    # x_ref  : (B, H, W*Cin)  bf16    input images, lanes = (w, cin)
    # w1_ref : (3, W*Cin,  W*Cout) bf16   banded per-kh stage-1 weights (BN folded)
    # w2_ref : (5, W*Cout, W*Cout) bf16   banded per-kh stage-2 weights (BN folded)
    # b*_ref : (1, W*Cout) f32            folded bias, tiled over W
    # o_ref  : (B, H, W*Cout) f32         lane-dense output
    # pad1_ref : VMEM (B, H+2, W*Cin)  f32   stage-1 input with row halo
    # pad2_ref : VMEM (B, H+4, W*Cout) f32   stage-2 input with row halo
    f32 = jnp.float32
    bf16 = jnp.bfloat16
    L1 = W * Cin
    L2 = W * Cout

    def row_window(ref, kh):
        # Full-lane window; only the sublane offset (kh) varies.
        if B == 1:
            return ref[0, kh:kh + H, :]
        return jnp.concatenate([ref[b, kh:kh + H, :] for b in range(B)], axis=0)

    # ---------------- stage 1: 3x3 conv + bias + ReLU ----------------
    # Zero only the halo rows (interior fully overwritten right after).
    pad1_ref[:, 0:1, :] = jnp.zeros((B, 1, L1), f32)
    pad1_ref[:, H + 1:H + 2, :] = jnp.zeros((B, 1, L1), f32)
    pad1_ref[:, 1:1 + H, :] = x_ref[...].astype(f32)

    acc1 = jnp.zeros((B * H, L2), f32)
    for kh in range(3):
        acc1 += jnp.dot(row_window(pad1_ref, kh).astype(bf16), w1_ref[kh],
                        preferred_element_type=f32)
    y1 = jnp.maximum(acc1 + b1_ref[...], 0.0)                 # (B*H, L2) f32

    # ---------------- stage 2: 5x5 conv + bias + ReLU ----------------
    pad2_ref[:, 0:2, :] = jnp.zeros((B, 2, L2), f32)
    pad2_ref[:, H + 2:H + 4, :] = jnp.zeros((B, 2, L2), f32)
    for b in range(B):
        pad2_ref[b, 2:2 + H, :] = y1[b * H:(b + 1) * H, :]

    acc2 = jnp.zeros((B * H, L2), f32)
    for kh in range(5):
        acc2 += jnp.dot(row_window(pad2_ref, kh).astype(bf16), w2_ref[kh],
                        preferred_element_type=f32)
    y2 = jnp.maximum(acc2 + b2_ref[...], 0.0)                 # (B*H, L2) f32

    o_ref[...] = y2.reshape(B, H, L2).astype(o_ref.dtype)     # lane-dense store


# ----------------------------------------------------------------------------
# One-time parameter preparation (outside the per-call path).
# ----------------------------------------------------------------------------
def _banded_weights(w_hwio, Wdim):
    """(KH, KW, Ci, Co) -> (KH, Wdim*Ci, Wdim*Co): per-kh banded tap matrices.

    B_kh[src*Ci + ci, w*Co + co] = w[kh, kw, ci, co]  with src = w + kw - pad,
    clipped at the image edges ('same' padding handled by zero weight blocks),
    so the kernel needs NO lane-dim zero padding.
    """
    KH, KW, Ci, Co = w_hwio.shape
    pad = (KW - 1) // 2
    bands = []
    for kh in range(KH):
        band = jnp.zeros((Wdim * Ci, Wdim * Co), jnp.float32)
        for kw in range(KW):
            shift = jnp.eye(Wdim, k=pad - kw, dtype=jnp.float32)   # (W, W)
            band = band + jnp.kron(shift, w_hwio[kh, kw].astype(jnp.float32))
        bands.append(band)
    return jnp.stack(bands, axis=0)


def prepare_params(params, W, eps=1e-5):
    """Fold inference BN + conv bias, expand banded weights, cast to bf16."""
    def fold(conv_bias, gamma, beta, run_mean, run_var):
        scale = gamma / jnp.sqrt(run_var + eps)
        bias = (conv_bias - run_mean) * scale + beta
        return scale, bias

    s1, b1 = fold(params["b1"], params["g1"], params["be1"],
                  params["rm1"], params["rv1"])
    s2, b2 = fold(params["b2"], params["g2"], params["be2"],
                  params["rm2"], params["rv2"])
    Cout = s1.shape[0]

    # BN scale folded into weight output columns (column j -> channel j % Cout).
    w1_bd = (_banded_weights(params["w1"], W)
             * jnp.tile(s1, W)[None, None, :]).astype(jnp.bfloat16)
    w2_bd = (_banded_weights(params["w2"], W)
             * jnp.tile(s2, W)[None, None, :]).astype(jnp.bfloat16)

    return {
        "w1": w1_bd,                                             # (3, W*Cin,  W*Cout)
        "b1": jnp.tile(b1, W).reshape(1, W * Cout).astype(jnp.float32),
        "w2": w2_bd,                                             # (5, W*Cout, W*Cout)
        "b2": jnp.tile(b2, W).reshape(1, W * Cout).astype(jnp.float32),
    }


# ----------------------------------------------------------------------------
# pallas_call wrapper
# ----------------------------------------------------------------------------
def fused_input_nhwc(x_nhwc, w1_bd, b1_t, w2_bd, b2_t):
    N, H, W, Cin = x_nhwc.shape
    Cout = b1_t.shape[-1] // W

    x2d = x_nhwc.reshape(N, H, W * Cin).astype(jnp.bfloat16)    # free reshape

    # Batch-block to grow the matmul M dimension, but keep >= 2 grid steps so
    # both v7x TensorCores get work.  (At the test shape: B_blk=1, grid=2.)
    B_blk = max(1, min(max(1, 128 // H), N // 2))
    while N % B_blk:
        B_blk -= 1
    B_blk = max(B_blk, 1)
    grid_n = N // B_blk

    kernel = functools.partial(_fused_input_kernel,
                               B=B_blk, H=H, W=W, Cin=Cin, Cout=Cout)

    # TODO(synk): mark the grid-invariant weight specs single-buffered once
    #             pipeline_mode=pl.Buffered(1) is verified on the target jaxlib.
    out2d = pl.pallas_call(
        kernel,
        out_shape=jax.ShapeDtypeStruct((N, H, W * Cout), jnp.float32),
        grid=(grid_n,),
        in_specs=[
            pl.BlockSpec((B_blk, H, W * Cin), lambda n: (n, 0, 0)),
            pl.BlockSpec((3, W * Cin, W * Cout), lambda n: (0, 0, 0)),
            pl.BlockSpec((1, W * Cout), lambda n: (0, 0)),
            pl.BlockSpec((5, W * Cout, W * Cout), lambda n: (0, 0, 0)),
            pl.BlockSpec((1, W * Cout), lambda n: (0, 0)),
        ],
        out_specs=pl.BlockSpec((B_blk, H, W * Cout), lambda n: (n, 0, 0)),
        scratch_shapes=[
            pltpu.VMEM((B_blk, H + 2, W * Cin), jnp.float32),
            pltpu.VMEM((B_blk, H + 4, W * Cout), jnp.float32),
        ],
        compiler_params=pltpu.CompilerParams(
            dimension_semantics=("parallel",),          # v7x: 2 TCs split batch
            vmem_limit_bytes=32 * 1024 * 1024),
    )(x2d, w1_bd, b1_t, w2_bd, b2_t)

    return out2d.reshape(N, H, W, Cout)


@jax.jit
def input_module_forward(x_nchw, prepared):
    """Pallas equivalent of Input.forward; input/output NCHW like PyTorch."""
    x = jnp.transpose(x_nchw, (0, 2, 3, 1))                      # NCHW -> NHWC
    y = fused_input_nhwc(x, prepared["w1"], prepared["b1"],
                         prepared["w2"], prepared["b2"])
    return jnp.transpose(y, (0, 3, 1, 2))                        # NHWC -> NCHW


# ----------------------------------------------------------------------------
# Synthetic parameters + pure-JAX reference (correctness check).
# ----------------------------------------------------------------------------
def make_params(key, ch_in, ch_out):
    ks = jax.random.split(key, 10)
    p = {}
    p["w1"] = 0.1 * jax.random.normal(ks[0], (3, 3, ch_in, ch_out), jnp.float32)
    p["b1"] = 0.1 * jax.random.normal(ks[1], (ch_out,), jnp.float32)
    p["g1"] = 1.0 + 0.1 * jax.random.normal(ks[2], (ch_out,), jnp.float32)
    p["be1"] = 0.1 * jax.random.normal(ks[3], (ch_out,), jnp.float32)
    p["rm1"] = 0.1 * jax.random.normal(ks[4], (ch_out,), jnp.float32)
    p["rv1"] = 0.5 + jnp.abs(jax.random.normal(ks[5], (ch_out,), jnp.float32))
    p["w2"] = 0.1 * jax.random.normal(ks[6], (5, 5, ch_out, ch_out), jnp.float32)
    p["b2"] = 0.1 * jax.random.normal(ks[7], (ch_out,), jnp.float32)
    p["g2"] = 1.0 + 0.1 * jax.random.normal(ks[8], (ch_out,), jnp.float32)
    p["be2"] = 0.1 * jax.random.normal(ks[9], (ch_out,), jnp.float32)
    p["rm2"] = jnp.zeros((ch_out,), jnp.float32)
    p["rv2"] = jnp.ones((ch_out,), jnp.float32)
    return p


def _ref_forward(x_nchw, params):
    x = jnp.transpose(x_nchw, (0, 2, 3, 1)).astype(jnp.float32)
    dn = ("NHWC", "HWIO", "NHWC")

    def block(x, w, cb, g, be, rm, rv, pad):
        y = lax.conv_general_dilated(x, w, (1, 1), [(pad, pad), (pad, pad)],
                                     dimension_numbers=dn,
                                     precision=lax.Precision.HIGHEST) + cb
        y = (y - rm) / jnp.sqrt(rv + 1e-5) * g + be
        return jnp.maximum(y, 0.0)

    x = block(x, params["w1"], params["b1"], params["g1"], params["be1"],
              params["rm1"], params["rv1"], 1)
    x = block(x, params["w2"], params["b2"], params["g2"], params["be2"],
              params["rm2"], params["rv2"], 2)
    return jnp.transpose(x, (0, 3, 1, 2))


if __name__ == "__main__":
    key = jax.random.PRNGKey(0)
    k_x, k_p = jax.random.split(key)

    N, CH_IN, CH_OUT, HW = 2, 4, 8, 16
    x = jax.random.normal(k_x, (N, CH_IN, HW, HW), jnp.float32)    # NCHW
    params = make_params(k_p, CH_IN, CH_OUT)
    prepared = prepare_params(params, HW)      # one-time weight expansion

    out = jax.block_until_ready(input_module_forward(x, prepared))
    ref = jax.block_until_ready(_ref_forward(x, params))

    assert out.shape == (N, CH_OUT, HW, HW), out.shape
    max_err = float(jnp.max(jnp.abs(out - ref)))
    # bf16 MXU inputs vs. a Precision.HIGHEST f32 reference -> loose tolerance.
    assert jnp.allclose(out, ref, atol=1e-1, rtol=5e-2), max_err

    print("KERNEL_OK")
</pallas_src>

<mosaic_0001>
module attributes {stable_mosaic.version = 11 : i64} {
  func.func @_fused_input_kernel(%arg0: i32, %arg1: memref<1x16x64xbf16, #tpu.memory_space<vmem>>, %arg2: memref<3x64x128xbf16, #tpu.memory_space<vmem>>, %arg3: memref<1x128xf32, #tpu.memory_space<vmem>>, %arg4: memref<5x128x128xbf16, #tpu.memory_space<vmem>>, %arg5: memref<1x128xf32, #tpu.memory_space<vmem>>, %arg6: memref<1x16x128xf32, #tpu.memory_space<vmem>>, %arg7: memref<1x18x64xf32, #tpu.memory_space<vmem>>, %arg8: memref<1x20x128xf32, #tpu.memory_space<vmem>>) attributes {dimension_semantics = [#tpu.dimension_semantics<parallel>], iteration_bounds = array<i64: 2>, scalar_prefetch = 0 : i64, scratch_operands = 2 : i64, tpu.core_type = #tpu.core_type<tc>, window_params = [{transform_indices = @transform_0, window_bounds = array<i64: 1, 16, 64>}, {pipeline_mode = #tpu.pipeline_mode<synchronous>, transform_indices = @transform_1, window_bounds = array<i64: 3, 64, 128>}, {pipeline_mode = #tpu.pipeline_mode<synchronous>, transform_indices = @transform_2, window_bounds = array<i64: 1, 128>}, {pipeline_mode = #tpu.pipeline_mode<synchronous>, transform_indices = @transform_3, window_bounds = array<i64: 5, 128, 128>}, {pipeline_mode = #tpu.pipeline_mode<synchronous>, transform_indices = @transform_4, window_bounds = array<i64: 1, 128>}, {transform_indices = @transform_5, window_bounds = array<i64: 1, 16, 128>}]} {
    %cst = arith.constant 0.000000e+00 : f32
    %0 = vector.broadcast %cst : f32 to vector<1x1x64xf32>
    %c0 = arith.constant 0 : index
    %c0_0 = arith.constant 0 : index
    %c0_1 = arith.constant 0 : index
    %1 = vector.load %arg7[%c0, %c0_0, %c0_1] : memref<1x18x64xf32, #tpu.memory_space<vmem>>, vector<1x1x64xf32>
    tpu.vector_store %arg7[%c0, %c0_0, %c0_1], %0 {strides = array<i32>} : memref<1x18x64xf32, #tpu.memory_space<vmem>>, vector<1x1x64xf32>,
    %cst_2 = arith.constant 0.000000e+00 : f32
    %2 = vector.broadcast %cst_2 : f32 to vector<1x1x64xf32>
    %c0_3 = arith.constant 0 : index
    %c17 = arith.constant 17 : index
    %c0_4 = arith.constant 0 : index
    %3 = vector.load %arg7[%c0_3, %c17, %c0_4] : memref<1x18x64xf32, #tpu.memory_space<vmem>>, vector<1x1x64xf32>
    tpu.vector_store %arg7[%c0_3, %c17, %c0_4], %2 {strides = array<i32>} : memref<1x18x64xf32, #tpu.memory_space<vmem>>, vector<1x1x64xf32>,
    %c0_5 = arith.constant 0 : index
    %c0_6 = arith.constant 0 : index
    %c0_7 = arith.constant 0 : index
    %4 = vector.load %arg1[%c0_5, %c0_6, %c0_7] : memref<1x16x64xbf16, #tpu.memory_space<vmem>>, vector<1x16x64xbf16>
    %5 = arith.extf %4 : vector<1x16x64xbf16> to vector<1x16x64xf32>
    %c0_8 = arith.constant 0 : index
    %c1 = arith.constant 1 : index
    %c0_9 = arith.constant 0 : index
    %6 = vector.load %arg7[%c0_8, %c1, %c0_9] : memref<1x18x64xf32, #tpu.memory_space<vmem>>, vector<1x16x64xf32>
    tpu.vector_store %arg7[%c0_8, %c1, %c0_9], %5 {strides = array<i32>} : memref<1x18x64xf32, #tpu.memory_space<vmem>>, vector<1x16x64xf32>,
    %cst_10 = arith.constant 0.000000e+00 : f32
    %7 = vector.broadcast %cst_10 : f32 to vector<16x128xf32>
    %c0_11 = arith.constant 0 : index
    %c0_12 = arith.constant 0 : index
    %c0_13 = arith.constant 0 : index
    %8 = vector.load %arg7[%c0_11, %c0_12, %c0_13] : memref<1x18x64xf32, #tpu.memory_space<vmem>>, vector<1x16x64xf32>
    %9 = vector.shape_cast %8 : vector<1x16x64xf32> to vector<16x64xf32>
    %10 = arith.truncf %9 : vector<16x64xf32> to vector<16x64xbf16>
    %c0_14 = arith.constant 0 : index
    %c0_15 = arith.constant 0 : index
    %c0_16 = arith.constant 0 : index
    %11 = vector.load %arg2[%c0_14, %c0_15, %c0_16] : memref<3x64x128xbf16, #tpu.memory_space<vmem>>, vector<1x64x128xbf16>
    %12 = vector.shape_cast %11 : vector<1x64x128xbf16> to vector<64x128xbf16>
    %cst_17 = arith.constant dense<0.000000e+00> : vector<16x128xf32>
    %13 = tpu.matmul %10, %12, %cst_17 {dimension_numbers = #tpu.dot_dimension_numbers<[1], [0], [0], [1], [0, 0, 1, 1], [], []>} : vector<16x64xbf16>, vector<64x128xbf16>, vector<16x128xf32> -> vector<16x128xf32>
    %14 = arith.addf %7, %13 : vector<16x128xf32>
    %c0_18 = arith.constant 0 : index
    %c1_19 = arith.constant 1 : index
    %c0_20 = arith.constant 0 : index
    %15 = vector.load %arg7[%c0_18, %c1_19, %c0_20] : memref<1x18x64xf32, #tpu.memory_space<vmem>>, vector<1x16x64xf32>
    %16 = vector.shape_cast %15 : vector<1x16x64xf32> to vector<16x64xf32>
    %17 = arith.truncf %16 : vector<16x64xf32> to vector<16x64xbf16>
    %c1_21 = arith.constant 1 : index
    %c0_22 = arith.constant 0 : index
    %c0_23 = arith.constant 0 : index
    %18 = vector.load %arg2[%c1_21, %c0_22, %c0_23] : memref<3x64x128xbf16, #tpu.memory_space<vmem>>, vector<1x64x128xbf16>
    %19 = vector.shape_cast %18 : vector<1x64x128xbf16> to vector<64x128xbf16>
    %cst_24 = arith.constant dense<0.000000e+00> : vector<16x128xf32>
    %20 = tpu.matmul %17, %19, %cst_24 {dimension_numbers = #tpu.dot_dimension_numbers<[1], [0], [0], [1], [0, 0, 1, 1], [], []>} : vector<16x64xbf16>, vector<64x128xbf16>, vector<16x128xf32> -> vector<16x128xf32>
    %21 = arith.addf %14, %20 : vector<16x128xf32>
    %c0_25 = arith.constant 0 : index
    %c2 = arith.constant 2 : index
    %c0_26 = arith.constant 0 : index
    %22 = vector.load %arg7[%c0_25, %c2, %c0_26] : memref<1x18x64xf32, #tpu.memory_space<vmem>>, vector<1x16x64xf32>
    %23 = vector.shape_cast %22 : vector<1x16x64xf32> to vector<16x64xf32>
    %24 = arith.truncf %23 : vector<16x64xf32> to vector<16x64xbf16>
    %c2_27 = arith.constant 2 : index
    %c0_28 = arith.constant 0 : index
    %c0_29 = arith.constant 0 : index
    %25 = vector.load %arg2[%c2_27, %c0_28, %c0_29] : memref<3x64x128xbf16, #tpu.memory_space<vmem>>, vector<1x64x128xbf16>
    %26 = vector.shape_cast %25 : vector<1x64x128xbf16> to vector<64x128xbf16>
    %cst_30 = arith.constant dense<0.000000e+00> : vector<16x128xf32>
    %27 = tpu.matmul %24, %26, %cst_30 {dimension_numbers = #tpu.dot_dimension_numbers<[1], [0], [0], [1], [0, 0, 1, 1], [], []>} : vector<16x64xbf16>, vector<64x128xbf16>, vector<16x128xf32> -> vector<16x128xf32>
    %28 = arith.addf %21, %27 : vector<16x128xf32>
    %c0_31 = arith.constant 0 : index
    %c0_32 = arith.constant 0 : index
    %29 = vector.load %arg3[%c0_31, %c0_32] : memref<1x128xf32, #tpu.memory_space<vmem>>, vector<1x128xf32>
    %30 = vector.broadcast %29 : vector<1x128xf32> to vector<16x128xf32>
    %31 = arith.addf %28, %30 : vector<16x128xf32>
    %cst_33 = arith.constant 0.000000e+00 : f32
    %32 = vector.broadcast %cst_33 : f32 to vector<16x128xf32>
    %33 = arith.maximumf %31, %32 : vector<16x128xf32>
    %cst_34 = arith.constant 0.000000e+00 : f32
    %34 = vector.broadcast %cst_34 : f32 to vector<1x2x128xf32>
    %c0_35 = arith.constant 0 : index
    %c0_36 = arith.constant 0 : index
    %c0_37 = arith.constant 0 : index
    %35 = vector.load %arg8[%c0_35, %c0_36, %c0_37] : memref<1x20x128xf32, #tpu.memory_space<vmem>>, vector<1x2x128xf32>
    tpu.vector_store %arg8[%c0_35, %c0_36, %c0_37], %34 {strides = array<i32>} : memref<1x20x128xf32, #tpu.memory_space<vmem>>, vector<1x2x128xf32>,
    %cst_38 = arith.constant 0.000000e+00 : f32
    %36 = vector.broadcast %cst_38 : f32 to vector<1x2x128xf32>
    %c0_39 = arith.constant 0 : index
    %c18 = arith.constant 18 : index
    %c0_40 = arith.constant 0 : index
    %37 = vector.load %arg8[%c0_39, %c18, %c0_40] : memref<1x20x128xf32, #tpu.memory_space<vmem>>, vector<1x2x128xf32>
    tpu.vector_store %arg8[%c0_39, %c18, %c0_40], %36 {strides = array<i32>} : memref<1x20x128xf32, #tpu.memory_space<vmem>>, vector<1x2x128xf32>,
    %c0_41 = arith.constant 0 : index
    %c2_42 = arith.constant 2 : index
    %c0_43 = arith.constant 0 : index
    %38 = vector.load %arg8[%c0_41, %c2_42, %c0_43] : memref<1x20x128xf32, #tpu.memory_space<vmem>>, vector<1x16x128xf32>
    %39 = vector.shape_cast %38 : vector<1x16x128xf32> to vector<16x128xf32>
    %40 = vector.shape_cast %33 : vector<16x128xf32> to vector<1x16x128xf32>
    tpu.vector_store %arg8[%c0_41, %c2_42, %c0_43], %40 {strides = array<i32>} : memref<1x20x128xf32, #tpu.memory_space<vmem>>, vector<1x16x128xf32>,
    %cst_44 = arith.constant 0.000000e+00 : f32
    %41 = vector.broadcast %cst_44 : f32 to vector<16x128xf32>
    %c0_45 = arith.constant 0 : index
    %c0_46 = arith.constant 0 : index
    %c0_47 = arith.constant 0 : index
    %42 = vector.load %arg8[%c0_45, %c0_46, %c0_47] : memref<1x20x128xf32, #tpu.memory_space<vmem>>, vector<1x16x128xf32>
    %43 = vector.shape_cast %42 : vector<1x16x128xf32> to vector<16x128xf32>
    %44 = arith.truncf %43 : vector<16x128xf32> to vector<16x128xbf16>
    %c0_48 = arith.constant 0 : index
    %c0_49 = arith.constant 0 : index
    %c0_50 = arith.constant 0 : index
    %45 = vector.load %arg4[%c0_48, %c0_49, %c0_50] : memref<5x128x128xbf16, #tpu.memory_space<vmem>>, vector<1x128x128xbf16>
    %46 = vector.shape_cast %45 : vector<1x128x128xbf16> to vector<128x128xbf16>
    %cst_51 = arith.constant dense<0.000000e+00> : vector<16x128xf32>
    %47 = tpu.matmul %44, %46, %cst_51 {dimension_numbers = #tpu.dot_dimension_numbers<[1], [0], [0], [1], [0, 0, 1, 1], [], []>} : vector<16x128xbf16>, vector<128x128xbf16>, vector<16x128xf32> -> vector<16x128xf32>
    %48 = arith.addf %41, %47 : vector<16x128xf32>
    %c0_52 = arith.constant 0 : index
    %c1_53 = arith.constant 1 : index
    %c0_54 = arith.constant 0 : index
    %49 = vector.load %arg8[%c0_52, %c1_53, %c0_54] : memref<1x20x128xf32, #tpu.memory_space<vmem>>, vector<1x16x128xf32>
    %50 = vector.shape_cast %49 : vector<1x16x128xf32> to vector<16x128xf32>
    %51 = arith.truncf %50 : vector<16x128xf32> to vector<16x128xbf16>
    %c1_55 = arith.constant 1 : index
    %c0_56 = arith.constant 0 : index
    %c0_57 = arith.constant 0 : index
    %52 = vector.load %arg4[%c1_55, %c0_56, %c0_57] : memref<5x128x128xbf16, #tpu.memory_space<vmem>>, vector<1x128x128xbf16>
    %53 = vector.shape_cast %52 : vector<1x128x128xbf16> to vector<128x128xbf16>
    %cst_58 = arith.constant dense<0.000000e+00> : vector<16x128xf32>
    %54 = tpu.matmul %51, %53, %cst_58 {dimension_numbers = #tpu.dot_dimension_numbers<[1], [0], [0], [1], [0, 0, 1, 1], [], []>} : vector<16x128xbf16>, vector<128x128xbf16>, vector<16x128xf32> -> vector<16x128xf32>
    %55 = arith.addf %48, %54 : vector<16x128xf32>
    %c0_59 = arith.constant 0 : index
    %c2_60 = arith.constant 2 : index
    %c0_61 = arith.constant 0 : index
    %56 = vector.load %arg8[%c0_59, %c2_60, %c0_61] : memref<1x20x128xf32, #tpu.memory_space<vmem>>, vector<1x16x128xf32>
    %57 = vector.shape_cast %56 : vector<1x16x128xf32> to vector<16x128xf32>
    %58 = arith.truncf %57 : vector<16x128xf32> to vector<16x128xbf16>
    %c2_62 = arith.constant 2 : index
    %c0_63 = arith.constant 0 : index
    %c0_64 = arith.constant 0 : index
    %59 = vector.load %arg4[%c2_62, %c0_63, %c0_64] : memref<5x128x128xbf16, #tpu.memory_space<vmem>>, vector<1x128x128xbf16>
    %60 = vector.shape_cast %59 : vector<1x128x128xbf16> to vector<128x128xbf16>
    %cst_65 = arith.constant dense<0.000000e+00> : vector<16x128xf32>
    %61 = tpu.matmul %58, %60, %cst_65 {dimension_numbers = #tpu.dot_dimension_numbers<[1], [0], [0], [1], [0, 0, 1, 1], [], []>} : vector<16x128xbf16>, vector<128x128xbf16>, vector<16x128xf32> -> vector<16x128xf32>
    %62 = arith.addf %55, %61 : vector<16x128xf32>
    %c0_66 = arith.constant 0 : index
    %c3 = arith.constant 3 : index
    %c0_67 = arith.constant 0 : index
    %63 = vector.load %arg8[%c0_66, %c3, %c0_67] : memref<1x20x128xf32, #tpu.memory_space<vmem>>, vector<1x16x128xf32>
    %64 = vector.shape_cast %63 : vector<1x16x128xf32> to vector<16x128xf32>
    %65 = arith.truncf %64 : vector<16x128xf32> to vector<16x128xbf16>
    %c3_68 = arith.constant 3 : index
    %c0_69 = arith.constant 0 : index
    %c0_70 = arith.constant 0 : index
    %66 = vector.load %arg4[%c3_68, %c0_69, %c0_70] : memref<5x128x128xbf16, #tpu.memory_space<vmem>>, vector<1x128x128xbf16>
    %67 = vector.shape_cast %66 : vector<1x128x128xbf16> to vector<128x128xbf16>
    %cst_71 = arith.constant dense<0.000000e+00> : vector<16x128xf32>
    %68 = tpu.matmul %65, %67, %cst_71 {dimension_numbers = #tpu.dot_dimension_numbers<[1], [0], [0], [1], [0, 0, 1, 1], [], []>} : vector<16x128xbf16>, vector<128x128xbf16>, vector<16x128xf32> -> vector<16x128xf32>
    %69 = arith.addf %62, %68 : vector<16x128xf32>
    %c0_72 = arith.constant 0 : index
    %c4 = arith.constant 4 : index
    %c0_73 = arith.constant 0 : index
    %70 = vector.load %arg8[%c0_72, %c4, %c0_73] : memref<1x20x128xf32, #tpu.memory_space<vmem>>, vector<1x16x128xf32>
    %71 = vector.shape_cast %70 : vector<1x16x128xf32> to vector<16x128xf32>
    %72 = arith.truncf %71 : vector<16x128xf32> to vector<16x128xbf16>
    %c4_74 = arith.constant 4 : index
    %c0_75 = arith.constant 0 : index
    %c0_76 = arith.constant 0 : index
    %73 = vector.load %arg4[%c4_74, %c0_75, %c0_76] : memref<5x128x128xbf16, #tpu.memory_space<vmem>>, vector<1x128x128xbf16>
    %74 = vector.shape_cast %73 : vector<1x128x128xbf16> to vector<128x128xbf16>
    %cst_77 = arith.constant dense<0.000000e+00> : vector<16x128xf32>
    %75 = tpu.matmul %72, %74, %cst_77 {dimension_numbers = #tpu.dot_dimension_numbers<[1], [0], [0], [1], [0, 0, 1, 1], [], []>} : vector<16x128xbf16>, vector<128x128xbf16>, vector<16x128xf32> -> vector<16x128xf32>
    %76 = arith.addf %69, %75 : vector<16x128xf32>
    %c0_78 = arith.constant 0 : index
    %c0_79 = arith.constant 0 : index
    %77 = vector.load %arg5[%c0_78, %c0_79] : memref<1x128xf32, #tpu.memory_space<vmem>>, vector<1x128xf32>
    %78 = vector.broadcast %77 : vector<1x128xf32> to vector<16x128xf32>
    %79 = arith.addf %76, %78 : vector<16x128xf32>
    %cst_80 = arith.constant 0.000000e+00 : f32
    %80 = vector.broadcast %cst_80 : f32 to vector<16x128xf32>
    %81 = arith.maximumf %79, %80 : vector<16x128xf32>
    %82 = vector.shape_cast %81 : vector<16x128xf32> to vector<1x16x128xf32>
    %c0_81 = arith.constant 0 : index
    %c0_82 = arith.constant 0 : index
    %c0_83 = arith.constant 0 : index
    %83 = vector.load %arg6[%c0_81, %c0_82, %c0_83] : memref<1x16x128xf32, #tpu.memory_space<vmem>>, vector<1x16x128xf32>
    tpu.vector_store %arg6[%c0_81, %c0_82, %c0_83], %82 {strides = array<i32>} : memref<1x16x128xf32, #tpu.memory_space<vmem>>, vector<1x16x128xf32>,
    return
  }
  func.func @transform_0(%arg0: i32) -> (i32, i32, i32) {
    %c0_i32 = arith.constant 0 : i32
    %c0_i32_0 = arith.constant 0 : i32
    %c0_i32_1 = arith.constant 0 : i32
    return %arg0, %c0_i32, %c0_i32_0 : i32, i32, i32
  }
  func.func @transform_1(%arg0: i32) -> (i32, i32, i32) {
    %c0_i32 = arith.constant 0 : i32
    %c0_i32_0 = arith.constant 0 : i32
    %c0_i32_1 = arith.constant 0 : i32
    %c0_i32_2 = arith.constant 0 : i32
    return %c0_i32, %c0_i32_0, %c0_i32_1 : i32, i32, i32
  }
  func.func @transform_2(%arg0: i32) -> (i32, i32) {
    %c0_i32 = arith.constant 0 : i32
    %c0_i32_0 = arith.constant 0 : i32
    %c0_i32_1 = arith.constant 0 : i32
    return %c0_i32, %c0_i32_0 : i32, i32
  }
  func.func @transform_3(%arg0: i32) -> (i32, i32, i32) {
    %c0_i32 = arith.constant 0 : i32
    %c0_i32_0 = arith.constant 0 : i32
    %c0_i32_1 = arith.constant 0 : i32
    %c0_i32_2 = arith.constant 0 : i32
    return %c0_i32, %c0_i32_0, %c0_i32_1 : i32, i32, i32
  }
  func.func @transform_4(%arg0: i32) -> (i32, i32) {
    %c0_i32 = arith.constant 0 : i32
    %c0_i32_0 = arith.constant 0 : i32
    %c0_i32_1 = arith.constant 0 : i32
    return %c0_i32, %c0_i32_0 : i32, i32
  }
  func.func @transform_5(%arg0: i32) -> (i32, i32, i32) {
    %c0_i32 = arith.constant 0 : i32
    %c0_i32_0 = arith.constant 0 : i32
    %c0_i32_1 = arith.constant 0 : i32
    return %arg0, %c0_i32, %c0_i32_0 : i32, i32, i32
  }
}

</mosaic_0001>

<bundles_post_ra>
// kernel: input_module_forward.1
= control target key start
LH: loop header
LB: loop body
LE: loop exit
PB: predicated region body
PF: predicated region fallthrough
CT: control target
= control target key end

     0   :  { %s1562_s18 = smov 0   ;;  %s1822_s0 = inlined_call_operand.vmem [shape: bf16[2,16,64], index: 0, kind: input, shape index: {}]   ;;  %s1823_s1 = inlined_call_operand.vmem [shape: bf16[3,64,128], index: 1, kind: input, shape index: {}]   ;;  %s1824_s2 = inlined_call_operand.vmem [shape: f32[1,128], index: 2, kind: input, shape index: {}]   ;;  %s1825_s3 = inlined_call_operand.vmem [shape: bf16[5,128,128], index: 3, kind: input, shape index: {}]   ;;  %s1826_s4 = inlined_call_operand.vmem [shape: f32[1,128], index: 4, kind: input, shape index: {}]   ;;  %s1827_s5 = inlined_call_operand.vmem [shape: f32[2,16,128], index: 5, kind: output, shape index: {}]  }
   0x1 LB: > { %s1110_s19 = sadd.s32 4294967295, %s1528_s18   ;;  %p1114_p0 = scmp.ge.s32.totalorder %s1528_s18, 1  ;;  %s1528_s18 = sphi %s1562_s18, %s15_s18  }
   0x2   : > { %p187_p1 = scmp.lt.s32.totalorder %s1528_s18, 3 }
   0x4   : > { %p188_p2 = pnand %p1114_p0, %p187_p1 }
   0x5   : > { %v1470_v0 = vld [vmem:[%s1823_s1 + $0x20] sm:$0xff] (!%p188_p2)   ;;  %v1530_v1 = vmov (!%p188_p2), 0.0   ;;  %v1472_v3 = vld [vmem:[%s1823_s1 + $0x28] sm:$0xff] (!%p188_p2)   ;;  %vm1531_vm0 = vmmov (!%p188_p2), 0   ;;  %p215_p3 = scmp.lt.s32.totalorder (!%p188_p2), %s1110_s19, 1  ;;  %vm226_vm1 = vcmask (!%p188_p2), 516096  }
   0x6   : > { %191 = sbr.rel (%p188_p2) target bundleno = 560 (0x230), region = 40  ;;  %1324 = vmatprep.subr.bf16.mxu0 (!%p188_p2), %v1530_v1  ;;  %488 = vst [vmem:[#allocation3] sm:$0x3] (!%p188_p2), %v1530_v1  ;;  %489 = vst [vmem:[#allocation3 + $0x12] sm:$0x3] (!%p188_p2), %v1530_v1  ;;  %1336 = vmatprep.subr.bf16.mxu1 (!%p188_p2), %v1530_v1  ;;  %v1471_v2 = vld [vmem:[%s1823_s1] sm:$0xff] (!%p188_p2)  }
   0x7   : > { %1325 = vmatpush3.bf16.msra.mxu0 (!%p188_p2), %v1470_v0  ;;  %1332 = vmatprep.mubr.msk.bf16.mxu0 (!%p188_p2), %vm1531_vm0, %v1530_v1  ;;  %v1473_v4 = vld [vmem:[%s1823_s1 + $0x8] sm:$0xff] (!%p188_p2)   ;;  %v1474_v5 = vld [vmem:[%s1823_s1 + $0x30] sm:$0xff] (!%p188_p2)   ;;  %227 = vst.msk [vmem:[#allocation2] sm:$0x1] (!%p188_p2), %vm226_vm1, %v1530_v1  ;;  %228 = vst.msk [vmem:[#allocation2 + $0x11] sm:$0x1] (!%p188_p2), %vm226_vm1, %v1530_v1 }
   0x8   : > { %1337 = vmatpush3.bf16.msra.mxu1 (!%p188_p2), %v1471_v2  ;;  %1326 = vmatprep.subr.bf16.mxu0 (!%p188_p2), %v1530_v1  ;;  %v1475_v6 = vld [vmem:[%s1823_s1 + $0x10] sm:$0xff] (!%p188_p2)   ;;  %vm233_vm2 = vcmask (!%p188_p2), 523264   ;;  %v1476_v10 = vld [vmem:[%s1823_s1 + $0x38] sm:$0xff] (!%p188_p2)   ;;  %v1478_v12 = vld [vmem:[%s1823_s1 + $0x40] sm:$0xff] (!%p188_p2)  }
   0x9   : > { %1338 = vmatprep.subr.bf16.mxu1 (!%p188_p2), %v1530_v1  ;;  %1344 = vmatprep.mubr.msk.bf16.mxu1 (!%p188_p2), %vm1531_vm0, %v1530_v1  ;;  %v1477_v11 = vld [vmem:[%s1823_s1 + $0x18] sm:$0xff] (!%p188_p2)   ;;  %v1479_v19 = vld [vmem:[%s1823_s1 + $0x48] sm:$0xff] (!%p188_p2)   ;;  %v1480_v20 = vld [vmem:[%s1823_s1 + $0x50] sm:$0xff] (!%p188_p2)  }
   0xa   : > { %v1481_v21 = vld [vmem:[%s1823_s1 + $0x58] sm:$0xff] (!%p188_p2)   ;;  %v1482_v25 = vld [vmem:[%s1825_s3 + $0x40] sm:$0xff] (!%p188_p2)   ;;  %v1484_v27 = vld [vmem:[%s1825_s3 + $0x48] sm:$0xff] (!%p188_p2)  }
   0xb   : > { %1327 = vmatpush3.bf16.msra.mxu0 (!%p188_p2), %v1472_v3  ;;  %v1483_v26 = vld [vmem:[%s1825_s3] sm:$0xff] (!%p188_p2)   ;;  %v1485_v28 = vld [vmem:[%s1825_s3 + $0x8] sm:$0xff] (!%p188_p2)   ;;  %v1486_v29 = vld [vmem:[%s1825_s3 + $0x50] sm:$0xff] (!%p188_p2)  }
   0xc   : > { %1339 = vmatpush3.bf16.msra.mxu1 (!%p188_p2), %v1473_v4  ;;  %1328 = vmatprep.subr.bf16.mxu0 (!%p188_p2), %v1530_v1  ;;  %v1487_v30 = vld [vmem:[%s1825_s3 + $0x10] sm:$0xff] (!%p188_p2)   ;;  %v1488_v31 = vld [vmem:[%s1825_s3 + $0x58] sm:$0xff] (!%p188_p2)   ;;  %v1490_v33 = vld [vmem:[%s1825_s3 + $0x60] sm:$0xff] (!%p188_p2)  }
   0xd   : > { %s1829_s19 = smov (!%p215_p3, %s1110_s19), 1  ;;  %1340 = vmatprep.subr.bf16.mxu1 %v1530_v1  ;;  %v1489_v32 = vld [vmem:[%s1825_s3 + $0x18] sm:$0xff]   ;;  %v1491_v34 = vld [vmem:[%s1825_s3 + $0x20] sm:$0xff]   ;;  %v1492_v35 = vld [vmem:[%s1825_s3 + $0x68] sm:$0xff]  }
   0xe   : > { %s1258_s30 = sshll.u32 %s1829_s19, 3  ;;  %v1493_v36 = vld [vmem:[%s1825_s3 + $0x28] sm:$0xff]   ;;  %v1494_v37 = vld [vmem:[%s1825_s3 + $0x70] sm:$0xff]   ;;  %v1496_v39 = vld [vmem:[%s1825_s3 + $0x78] sm:$0xff]   ;;  %s1259_s15 = sshll.u32 %s1829_s19, 4 }
   0xf   : > { %s219_s10 = scalar_lea.vmem %s1822_s0, %s1258_s30  ;;  %1329 = vmatpush3.bf16.msra.mxu0 %v1474_v5  ;;  %v1495_v38 = vld [vmem:[%s1825_s3 + $0x30] sm:$0xff]   ;;  %v1497_v40 = vld [vmem:[%s1825_s3 + $0x38] sm:$0xff]   ;;  %v1150_v52 = vld [vmem:[%s1824_s2] ss:$0 sm:$0xff]  ;;  %s224_s20 = scalar_lea.vmem %s1827_s5, %s1259_s15 }
  0x10   : > { %v1261_v7 = vld [vmem:[%s219_s10] sm:$0xff]   ;;  %1341 = vmatpush3.bf16.msra.mxu1 %v1475_v6  ;;  %1330 = vmatprep.subr.bf16.mxu0 %v1530_v1 }
  0x11   : > { %v1262_v8 = vunpack.c.l.bf16 %v1261_v7  ;;  %v1263_v9 = vunpack.c.h.bf16 %v1261_v7  ;;  %1342 = vmatprep.subr.bf16.mxu1 %v1530_v1  ;;  %v1498_v0 = vld [vmem:[%s1825_s3 + $0x80] sm:$0xff]  }
  0x12   : > { %v1499_v2 = vld [vmem:[%s1825_s3 + $0xc0] sm:$0xff]  }
  0x13   : > { %234 = vst.msk [vmem:[#allocation2 + $0x1] sm:$0xff] %vm233_vm2, %v1262_v8  ;;  %235 = vst.msk [vmem:[#allocation2 + $0x9] sm:$0xff] %vm233_vm2, %v1263_v9  ;;  %1331 = vmatpush3.bf16.msra.mxu0 %v1476_v10  ;;  %v1500_v8 = vld [vmem:[%s1825_s3 + $0x88] sm:$0xff]   ;;  %v1502_v10 = vld [vmem:[%s1825_s3 + $0x90] sm:$0xff]  }
  0x14   : > { %1343 = vmatpush3.bf16.msra.mxu1 %v1477_v11  ;;  %1348 = vmatprep.subr.bf16.mxu0 %v1530_v1  ;;  %v1501_v9 = vld [vmem:[%s1825_s3 + $0xc8] sm:$0xff]   ;;  %v1503_v11 = vld [vmem:[%s1825_s3 + $0xd0] sm:$0xff]  }
  0x15   : > { %1360 = vmatprep.subr.bf16.mxu1 %v1530_v1 }
  0x1a   : > { %v247_v13 = vld [vmem:[#allocation2 + $0x1] sm:$0xff]  ;;  %v248_v14 = vld [vmem:[#allocation2 + $0x9] sm:$0xff] }
  0x1b   : > { %v236_v15 = vld [vmem:[#allocation2] sm:$0xff]  ;;  %v249_v16 = vpack.c.bf16 %v248_v14, %v247_v13  ;;  %v237_v17 = vld [vmem:[#allocation2 + $0x8] sm:$0xff]  ;;  %v1505_v13 = vld [vmem:[%s1825_s3 + $0xd8] sm:$0xff]  }
  0x1c   : > { %v238_v18 = vpack.c.bf16 %v237_v17, %v236_v15  ;;  %v395_v22 = vld [vmem:[#allocation2 + $0x2] sm:$0xff]  ;;  %v396_v23 = vld [vmem:[#allocation2 + $0xa] sm:$0xff] }
  0x1d   : > { %1333 = vmatmul.mubr.msk.bf16.vlgmr.msra.gmra.mrb[0].mxu0 %vm233_vm2, %v249_v16  ;;  %v397_v24 = vpack.c.bf16 %v396_v23, %v395_v22  ;;  %v1506_v14 = vld [vmem:[%s1825_s3 + $0xa0] sm:$0xff]   ;;  %v1508_v16 = vld [vmem:[%s1825_s3 + $0xa8] sm:$0xff]  }
  0x1e   : > { %1345 = vmatmul.mubr.msk.bf16.vlgmr.msra.gmra.mrb[0].mxu1 %vm233_vm2, %v238_v18  ;;  %1349 = vmatpush3.bf16.msra.mxu0 %v1478_v12  ;;  %v1504_v12 = vld [vmem:[%s1825_s3 + $0x98] sm:$0xff]   ;;  %v1507_v15 = vld [vmem:[%s1825_s3 + $0xe0] sm:$0xff]   ;;  %v1509_v17 = vld [vmem:[%s1825_s3 + $0xe8] sm:$0xff]  }
  0x1f   : > { %1350 = vmatprep.subr.bf16.mxu0 %v1530_v1  ;;  %1356 = vmatprep.mubr.msk.bf16.mxu0 %vm1531_vm0, %v1530_v1  ;;  %v1510_v18 = vld [vmem:[%s1825_s3 + $0xb0] sm:$0xff]  }
  0x20   : > { %1376 = vmatprep.mubr.msk.bf16.mxu1 %vm1531_vm0, %v1530_v1  ;;  %1361 = vmatpush3.bf16.msra.mxu1 %v1482_v25 }
  0x21   : > { %1362 = vmatprep.subr.bf16.mxu1 %v1530_v1 }
  0x22   : > { %1351 = vmatpush3.bf16.msra.mxu0 %v1479_v19  ;;  %v1511_v19 = vld [vmem:[%s1825_s3 + $0xf0] sm:$0xff]  }
  0x23   : > { %1352 = vmatprep.subr.bf16.mxu0 %v1530_v1 }
  0x24   : > { %1363 = vmatpush3.bf16.msra.mxu1 %v1484_v27  ;;  %v1516_v27 = vld [vmem:[%s1825_s3 + $0x110] sm:$0xff]  }
  0x25   : > { %1364 = vmatprep.subr.bf16.mxu1 %v1530_v1 }
  0x26   : > { %1353 = vmatpush3.bf16.msra.mxu0 %v1480_v20  ;;  %v1512_v20 = vld [vmem:[%s1825_s3 + $0xb8] sm:$0xff]  }
  0x27   : > { %1354 = vmatprep.subr.bf16.mxu0 %v1530_v1 }
  0x28   : > { %1365 = vmatpush3.bf16.msra.mxu1 %v1486_v29  ;;  %v1518_v29 = vld [vmem:[%s1825_s3 + $0x120] sm:$0xff]  }
  0x29   : > { %1366 = vmatprep.subr.bf16.mxu1 %v1530_v1 }
  0x2a   : > { %1355 = vmatpush3.bf16.msra.mxu0 %v1481_v21  ;;  %v1513_v21 = vld [vmem:[%s1825_s3 + $0xf8] sm:$0xff]  }
  0x2b   : > { %1380 = vmatprep.subr.bf16.mxu0 %v1530_v1 }
  0x2c   : > { %1367 = vmatpush3.bf16.msra.mxu1 %v1488_v31  ;;  %v1520_v31 = vld [vmem:[%s1825_s3 + $0x130] sm:$0xff]  }
  0x2d   : > { %1357 = vmatmul.mubr.msk.bf16.vlgmr.msra.gmra.mrb[4].mxu0 %vm233_vm2, %v397_v24  ;;  %1368 = vmatprep.subr.bf16.mxu1 %v1530_v1  ;;  %v1514_v24 = vld [vmem:[%s1825_s3 + $0x100] sm:$0xff]  }
  0x2e   : > { %1396 = vmatprep.mubr.msk.bf16.mxu0 %vm1531_vm0, %v1530_v1  ;;  %1381 = vmatpush3.bf16.msra.mxu0 %v1483_v26  ;;  %v1515_v26 = vld [vmem:[%s1825_s3 + $0x108] sm:$0xff]  }
  0x2f   : > { %1382 = vmatprep.subr.bf16.mxu0 %v1530_v1 }
  0x30   : > { %1369 = vmatpush3.bf16.msra.mxu1 %v1490_v33 }
  0x31   : > { %1370 = vmatprep.subr.bf16.mxu1 %v1530_v1 }
  0x32   : > { %1383 = vmatpush3.bf16.msra.mxu0 %v1485_v28  ;;  %v1517_v28 = vld [vmem:[%s1825_s3 + $0x118] sm:$0xff]  }
  0x33   : > { %1384 = vmatprep.subr.bf16.mxu0 %v1530_v1 }
  0x34   : > { %1371 = vmatpush3.bf16.msra.mxu1 %v1492_v35 }
  0x35   : > { %1372 = vmatprep.subr.bf16.mxu1 %v1530_v1 }
  0x36   : > { %1385 = vmatpush3.bf16.msra.mxu0 %v1487_v30  ;;  %v1519_v30 = vld [vmem:[%s1825_s3 + $0x128] sm:$0xff]  }
  0x37   : > { %1386 = vmatprep.subr.bf16.mxu0 %v1530_v1 }
  0x38   : > { %1373 = vmatpush3.bf16.msra.mxu1 %v1494_v37 }
  0x39   : > { %1374 = vmatprep.subr.bf16.mxu1 %v1530_v1 }
  0x3a   : > { %1387 = vmatpush3.bf16.msra.mxu0 %v1489_v32  ;;  %v1521_v32 = vld [vmem:[%s1825_s3 + $0x138] sm:$0xff]  }
  0x3b   : > { %1388 = vmatprep.subr.bf16.mxu0 %v1530_v1 }
  0x3c   : > { %1375 = vmatpush3.bf16.msra.mxu1 %v1496_v39 }
  0x3d   : > { %1400 = vmatprep.subr.bf16.mxu1 %v1530_v1 }
  0x3e   : > { %1389 = vmatpush3.bf16.msra.mxu0 %v1491_v34 }
  0x3f   : > { %1390 = vmatprep.subr.bf16.mxu0 %v1530_v1 }
  0x42   : > { %1391 = vmatpush3.bf16.msra.mxu0 %v1493_v36 }
  0x43   : > { %1392 = vmatprep.subr.bf16.mxu0 %v1530_v1 }
  0x46   : > { %1393 = vmatpush3.bf16.msra.mxu0 %v1495_v38 }
  0x47   : > { %1394 = vmatprep.subr.bf16.mxu0 %v1530_v1 }
  0x4a   : > { %1395 = vmatpush3.bf16.msra.mxu0 %v1497_v40 }
  0x4b   : > { %1420 = vmatprep.subr.bf16.mxu0 %v1530_v1 }
  0xf0   : > { %v320_v41 = vpop.f32.mrb[0].mxu0 }
  0xf1   : > { %v388_v42 = vpop.f32.mrb[0].mxu1  ;;  %v1334_v43 = vpop.f32.mrb[1].mxu0 }
  0xf2   : > { %v389_v44 = vadd.f32 %v388_v42, %v320_v41  ;;  %v1346_v45 = vpop.f32.mrb[1].mxu1  ;;  %v323_v46 = vpop.f32.mrb[2].mxu0 }
  0xf3   : > { %v391_v47 = vpop.f32.mrb[2].mxu1  ;;  %v1335_v48 = vpop.f32.mrb[3].mxu0 }
  0xf4   : > { %v392_v49 = vadd.f32 %v391_v47, %v323_v46  ;;  %v1347_v50 = vpop.f32.mrb[3].mxu1 }
 0x100   : > { %v468_v51 = vpop.f32.mrb[4].mxu0 }
 0x101   : > { %v475_v53 = vadd.f32 %v468_v51, %v389_v44  ;;  %v1358_v54 = vpop.f32.mrb[5].mxu0 }
 0x102   : > { %v471_v55 = vpop.f32.mrb[6].mxu0 }
 0x103   : > { %v484_v56 = vadd.f32 %v1150_v52, %v475_v53  ;;  %v476_v57 = vadd.f32 %v471_v55, %v392_v49  ;;  %v1359_v58 = vpop.f32.mrb[7].mxu0 }
 0x104   : > { %v1255_v58 = vld [vmem:[%s1826_s4] ss:$0 sm:$0xff] }
 0x105   : > { %v486_v59 = vmax.f32 %v484_v56, 0.0  ;;  %v485_v60 = vadd.f32 %v1150_v52, %v476_v57 }
 0x107   : > { %490 = vst [vmem:[#allocation3 + $0x2] sm:$0xff] %v486_v59  ;;  %v487_v61 = vmax.f32 %v485_v60, 0.0 }
 0x109   : > { %491 = vst [vmem:[#allocation3 + $0xa] sm:$0xff] %v487_v61  ;;  %v711_v62 = vpack.c.bf16 %v487_v61, %v486_v59 }
 0x10e   : > { %v511_v63 = vld [vmem:[#allocation3 + $0x1] sm:$0xff] }
 0x10f   : > { %v492_v4 = vld [vmem:[#allocation3] sm:$0xff] }
 0x110   : > { %v512_v3 = vld [vmem:[#allocation3 + $0x9] sm:$0xff] }
 0x111   : > { %v493_v5 = vld [vmem:[#allocation3 + $0x8] sm:$0xff]  ;;  %v513_v6 = vpack.c.bf16 %v512_v3, %v511_v63 }
 0x112   : > { %v494_v7 = vpack.c.bf16 %v493_v5, %v492_v4  ;;  %v820_v22 = vld [vmem:[#allocation3 + $0x3] sm:$0xff]  ;;  %v821_v23 = vld [vmem:[#allocation3 + $0xb] sm:$0xff] }
 0x113   : > { %1377 = vmatmul.mubr.bf16.vlgmr.msra.gmra.mrb[4].mxu1 %v513_v6  ;;  %v822_v25 = vpack.c.bf16 %v821_v23, %v820_v22  ;;  %v931_v33 = vld [vmem:[#allocation3 + $0x4] sm:$0xff]  ;;  %v932_v34 = vld [vmem:[#allocation3 + $0xc] sm:$0xff] }
 0x114   : > { %1397 = vmatmul.mubr.bf16.vlgmr.msra.gmra.mrb[8].mxu0 %v494_v7  ;;  %1401 = vmatpush3.bf16.msra.mxu1 %v1498_v0  ;;  %v933_v35 = vpack.c.bf16 %v932_v34, %v931_v33 }
 0x115   : > { %1421 = vmatpush3.bf16.msra.mxu0 %v1499_v2  ;;  %1402 = vmatprep.subr.bf16.mxu1 %v1530_v1 }
 0x116   : > { %1422 = vmatprep.subr.bf16.mxu0 %v1530_v1  ;;  %1416 = vmatprep.mubr.msk.bf16.mxu1 %vm1531_vm0, %v1530_v1 }
 0x117   : > { %1436 = vmatprep.mubr.msk.bf16.mxu0 %vm1531_vm0, %v1530_v1 }
 0x118   : > { %1403 = vmatpush3.bf16.msra.mxu1 %v1500_v8 }
 0x119   : > { %1423 = vmatpush3.bf16.msra.mxu0 %v1501_v9  ;;  %1404 = vmatprep.subr.bf16.mxu1 %v1530_v1 }
 0x11a   : > { %1424 = vmatprep.subr.bf16.mxu0 %v1530_v1 }
 0x11c   : > { %1405 = vmatpush3.bf16.msra.mxu1 %v1502_v10 }
 0x11d   : > { %1425 = vmatpush3.bf16.msra.mxu0 %v1503_v11  ;;  %1406 = vmatprep.subr.bf16.mxu1 %v1530_v1 }
 0x11e   : > { %1426 = vmatprep.subr.bf16.mxu0 %v1530_v1 }
 0x120   : > { %1407 = vmatpush3.bf16.msra.mxu1 %v1504_v12 }
 0x121   : > { %1427 = vmatpush3.bf16.msra.mxu0 %v1505_v13  ;;  %1408 = vmatprep.subr.bf16.mxu1 %v1530_v1 }
 0x122   : > { %1428 = vmatprep.subr.bf16.mxu0 %v1530_v1 }
 0x124   : > { %1409 = vmatpush3.bf16.msra.mxu1 %v1506_v14 }
 0x125   : > { %1429 = vmatpush3.bf16.msra.mxu0 %v1507_v15  ;;  %1410 = vmatprep.subr.bf16.mxu1 %v1530_v1 }
 0x126   : > { %1430 = vmatprep.subr.bf16.mxu0 %v1530_v1 }
 0x128   : > { %1411 = vmatpush3.bf16.msra.mxu1 %v1508_v16 }
 0x129   : > { %1431 = vmatpush3.bf16.msra.mxu0 %v1509_v17  ;;  %1412 = vmatprep.subr.bf16.mxu1 %v1530_v1 }
 0x12a   : > { %1432 = vmatprep.subr.bf16.mxu0 %v1530_v1 }
 0x12c   : > { %1413 = vmatpush3.bf16.msra.mxu1 %v1510_v18 }
 0x12d   : > { %1433 = vmatpush3.bf16.msra.mxu0 %v1511_v19  ;;  %1414 = vmatprep.subr.bf16.mxu1 %v1530_v1 }
 0x12e   : > { %1434 = vmatprep.subr.bf16.mxu0 %v1530_v1 }
 0x130   : > { %1415 = vmatpush3.bf16.msra.mxu1 %v1512_v20 }
 0x131   : > { %1435 = vmatpush3.bf16.msra.mxu0 %v1513_v21  ;;  %1440 = vmatprep.subr.bf16.mxu1 %v1530_v1 }
 0x133   : > { %1417 = vmatmul.mubr.bf16.vlgmr.msra.gmra.mrb[8].mxu1 %v711_v62 }
 0x134   : > { %1437 = vmatmul.mubr.bf16.vlgmr.msra.gmra.mrb[12].mxu0 %v822_v25  ;;  %1441 = vmatpush3.bf16.msra.mxu1 %v1514_v24 }
 0x135   : > { %1456 = vmatprep.mubr.msk.bf16.mxu1 %vm1531_vm0, %v1530_v1  ;;  %1442 = vmatprep.subr.bf16.mxu1 %v1530_v1 }
 0x138   : > { %1443 = vmatpush3.bf16.msra.mxu1 %v1515_v26 }
 0x139   : > { %1444 = vmatprep.subr.bf16.mxu1 %v1530_v1 }
 0x13c   : > { %1445 = vmatpush3.bf16.msra.mxu1 %v1516_v27 }
 0x13d   : > { %1446 = vmatprep.subr.bf16.mxu1 %v1530_v1 }
 0x140   : > { %1447 = vmatpush3.bf16.msra.mxu1 %v1517_v28 }
 0x141   : > { %1448 = vmatprep.subr.bf16.mxu1 %v1530_v1 }
 0x144   : > { %1449 = vmatpush3.bf16.msra.mxu1 %v1518_v29 }
 0x145   : > { %1450 = vmatprep.subr.bf16.mxu1 %v1530_v1 }
 0x148   : > { %1451 = vmatpush3.bf16.msra.mxu1 %v1519_v30 }
 0x149   : > { %1452 = vmatprep.subr.bf16.mxu1 %v1530_v1 }
 0x14c   : > { %1453 = vmatpush3.bf16.msra.mxu1 %v1520_v31 }
 0x14d   : > { %1454 = vmatprep.subr.bf16.mxu1 %v1530_v1 }
 0x150   : > { %1455 = vmatpush3.bf16.msra.mxu1 %v1521_v32 }
 0x153   : > { %1457 = vmatmul.mubr.bf16.vlgmr.msra.gmra.mrb[12].mxu1 %v933_v35 }
 0x1e6   : > { %v613_v36 = vpop.f32.mrb[4].mxu1 }
 0x1e7   : > { %v702_v37 = vpop.f32.mrb[8].mxu0  ;;  %v1378_v39 = vpop.f32.mrb[5].mxu1 }
 0x1e8   : > { %v703_v38 = vadd.f32 %v702_v37, %v613_v36  ;;  %v1398_v40 = vpop.f32.mrb[9].mxu0  ;;  %v616_v41 = vpop.f32.mrb[6].mxu1 }
 0x1e9   : > { %v705_v42 = vpop.f32.mrb[10].mxu0  ;;  %v1379_v44 = vpop.f32.mrb[7].mxu1 }
 0x1ea   : > { %v706_v43 = vadd.f32 %v705_v42, %v616_v41  ;;  %v1399_v45 = vpop.f32.mrb[11].mxu0 }
 0x206   : > { %v811_v46 = vpop.f32.mrb[8].mxu1 }
 0x207   : > { %v922_v47 = vpop.f32.mrb[12].mxu0  ;;  %v818_v48 = vadd.f32 %v811_v46, %v703_v38  ;;  %v1418_v1 = vpop.f32.mrb[9].mxu1 }
 0x208   : > { %v1438_v49 = vpop.f32.mrb[13].mxu0  ;;  %v814_v50 = vpop.f32.mrb[10].mxu1 }
 0x209   : > { %v925_v51 = vpop.f32.mrb[14].mxu0  ;;  %v929_v52 = vadd.f32 %v922_v47, %v818_v48  ;;  %v819_v53 = vadd.f32 %v814_v50, %v706_v43  ;;  %v1419_v54 = vpop.f32.mrb[11].mxu1 }
 0x20a   : > { %v1439_v55 = vpop.f32.mrb[15].mxu0 }
 0x20b   : > { %v930_v56 = vadd.f32 %v925_v51, %v819_v53 }
 0x226   : > { %v1033_v57 = vpop.f32.mrb[12].mxu1 }
 0x227   : > { %v1040_v59 = vadd.f32 %v1033_v57, %v929_v52  ;;  %v1458_v60 = vpop.f32.mrb[13].mxu1 }
 0x228   : > { %v1036_v61 = vpop.f32.mrb[14].mxu1 }
 0x229   : > { %v1049_v62 = vadd.f32 %v1255_v58, %v1040_v59  ;;  %v1041_v63 = vadd.f32 %v1036_v61, %v930_v56  ;;  %v1459_v0 = vpop.f32.mrb[15].mxu1 }
 0x22b   : > { %v1051_v2 = vmax.f32 %v1049_v62, 0.0  ;;  %v1050_v3 = vadd.f32 %v1255_v58, %v1041_v63 }
 0x22d   : > { %1053 = vst [vmem:[%s224_s20] sm:$0xff] %v1051_v2  ;;  %v1052_v4 = vmax.f32 %v1050_v3, 0.0 }
 0x22f   : > { %1054 = vst [vmem:[%s224_s20 + $0x8] sm:$0xff] %v1052_v4 }
 0x230 PF: > { %s15_s18 = sadd.s32 1, %s1528_s18  }
 0x231   : > { %p12_p4 = scmp.ge.s32.totalorder %s15_s18, 4  }
 0x233   :  { %14 = sbr.rel (!%p12_p4) target bundleno = 1 (0x1), region = 76 }

</bundles_post_ra>
